<compile_context>
chip_gen: v7x
topology: tpu7x:2x2x1
jax: 0.10.0
libtpu: 0.0.40
codegen_flags: <defaults>
</compile_context>

<pallas_src>
import functools

import jax
import jax.numpy as jnp
from jax.experimental import pallas as pl
from jax.experimental.pallas import tpu as pltpu


def _round_up(n: int, m: int) -> int:
    return ((n + m - 1) // m) * m


def _graphsage_fwd_kernel(w_ref, x_ref, o_ref):
    # w_ref: (C, F)  resident weight tile
    # x_ref: (F, TN) streamed activation tile (nodes on the lane axis)
    # o_ref: (C, TN) lane-dense output tile
    o_ref[...] = jnp.dot(
        w_ref[...], x_ref[...], preferred_element_type=jnp.float32
    ).astype(o_ref.dtype)


@functools.partial(jax.jit, static_argnames=("tn",))
def supervised_graphsage_forward(weight, x, *, tn: int = 256):
    """weight: (C, F) f32, x: (F, N) f32 -> (N, C) f32  == (weight.mm(x)).t()"""
    C, F = weight.shape
    F2, N = x.shape
    assert F == F2, "feature dims must match"

    # Lane-dense node tiling: TN is a multiple of 128; pad N up to a multiple
    # of TN so every kernel store is a full, unmasked vector store.
    tn = min(tn, _round_up(N, 128))
    n_pad = _round_up(N, tn)
    if n_pad != N:
        x = jnp.pad(x, ((0, 0), (0, n_pad - N)))
    grid_n = n_pad // tn

    scores_cn = pl.pallas_call(
        _graphsage_fwd_kernel,
        out_shape=jax.ShapeDtypeStruct((C, n_pad), jnp.float32),
        grid=(grid_n,),
        in_specs=[
            # Full weight tile, constant index_map -> stays resident in VMEM.
            pl.BlockSpec((C, F), lambda i: (0, 0)),
            # Stream the node axis of x tile-by-tile.
            pl.BlockSpec((F, tn), lambda i: (0, i)),
        ],
        out_specs=pl.BlockSpec((C, tn), lambda i: (0, i)),
        compiler_params=pltpu.CompilerParams(
            dimension_semantics=("parallel",),
        ),
        cost_estimate=pl.CostEstimate(
            flops=2 * C * F * n_pad,
            transcendentals=0,
            bytes_accessed=4 * (C * F + F * n_pad + C * n_pad),
        ),
    )(weight, x)

    # (C, N_pad) -> (N, C): tiny transpose done once outside the kernel so
    # kernel stores stay lane-dense (C is typically << 128).
    return scores_cn[:, :N].T


def _xavier_uniform(key, shape, dtype=jnp.float32):
    fan_out, fan_in = shape  # (num_classes, num_features)
    bound = (6.0 / (fan_in + fan_out)) ** 0.5
    return jax.random.uniform(key, shape, dtype=dtype, minval=-bound, maxval=bound)


if __name__ == "__main__":
    num_features = 64
    num_classes = 8
    num_nodes = 640  # exercises multi-tile grid (TN=256 -> 3 tiles, padded to 768)

    key = jax.random.PRNGKey(0)
    k_w, k_x = jax.random.split(key)

    # Deterministic parameter init mirroring init.xavier_uniform(self.weight).
    weight = _xavier_uniform(k_w, (num_classes, num_features))
    # Node feature matrix, feature-major as the PyTorch forward expects.
    x = jax.random.normal(k_x, (num_features, num_nodes), dtype=jnp.float32)

    out = supervised_graphsage_forward(weight, x)
    out = jax.block_until_ready(out)

    # Reference check against the plain-JAX equivalent of weight.mm(x).t()
    ref = (weight @ x).T
    assert out.shape == (num_nodes, num_classes)
    assert jnp.allclose(out, ref, atol=1e-5, rtol=1e-5)

    # TODO(synk): loss() applies nn.CrossEntropyLoss to the scores; only the
    # forward hot path (the matmul) is implemented as a Pallas kernel here.
    # TODO(synk): aggregator / _encode are unused no-ops in the reference
    # module's forward and are not translated.
    print("KERNEL_OK")
</pallas_src>

<mosaic_0001>
module attributes {stable_mosaic.version = 11 : i64} {
  func.func @_graphsage_fwd_kernel(%arg0: i32, %arg1: memref<8x64xf32, #tpu.memory_space<vmem>>, %arg2: memref<64x256xf32, #tpu.memory_space<vmem>>, %arg3: memref<8x256xf32, #tpu.memory_space<vmem>>) attributes {dimension_semantics = [#tpu.dimension_semantics<parallel>], iteration_bounds = array<i64: 3>, scalar_prefetch = 0 : i64, scratch_operands = 0 : i64, tpu.core_type = #tpu.core_type<tc>, window_params = [{pipeline_mode = #tpu.pipeline_mode<synchronous>, transform_indices = @transform_0, window_bounds = array<i64: 8, 64>}, {transform_indices = @transform_1, window_bounds = array<i64: 64, 256>}, {transform_indices = @transform_2, window_bounds = array<i64: 8, 256>}]} {
    %c0 = arith.constant 0 : index
    %c0_0 = arith.constant 0 : index
    %0 = vector.load %arg1[%c0, %c0_0] : memref<8x64xf32, #tpu.memory_space<vmem>>, vector<8x64xf32>
    %c0_1 = arith.constant 0 : index
    %c0_2 = arith.constant 0 : index
    %1 = vector.load %arg2[%c0_1, %c0_2] : memref<64x256xf32, #tpu.memory_space<vmem>>, vector<64x256xf32>
    %cst = arith.constant dense<0.000000e+00> : vector<8x256xf32>
    %2 = tpu.matmul %0, %1, %cst {dimension_numbers = #tpu.dot_dimension_numbers<[1], [0], [0], [1], [0, 0, 1, 1], [], []>} : vector<8x64xf32>, vector<64x256xf32>, vector<8x256xf32> -> vector<8x256xf32>
    %c0_3 = arith.constant 0 : index
    %c0_4 = arith.constant 0 : index
    %3 = vector.load %arg3[%c0_3, %c0_4] : memref<8x256xf32, #tpu.memory_space<vmem>>, vector<8x256xf32>
    tpu.vector_store %arg3[%c0_3, %c0_4], %2 {strides = array<i32>} : memref<8x256xf32, #tpu.memory_space<vmem>>, vector<8x256xf32>,
    return
  }
  func.func @transform_0(%arg0: i32) -> (i32, i32) {
    %c0_i32 = arith.constant 0 : i32
    %c0_i32_0 = arith.constant 0 : i32
    %c0_i32_1 = arith.constant 0 : i32
    return %c0_i32, %c0_i32_0 : i32, i32
  }
  func.func @transform_1(%arg0: i32) -> (i32, i32) {
    %c0_i32 = arith.constant 0 : i32
    %c0_i32_0 = arith.constant 0 : i32
    return %c0_i32, %arg0 : i32, i32
  }
  func.func @transform_2(%arg0: i32) -> (i32, i32) {
    %c0_i32 = arith.constant 0 : i32
    %c0_i32_0 = arith.constant 0 : i32
    return %c0_i32, %arg0 : i32, i32
  }
}

</mosaic_0001>

<bundles_post_ra>
// kernel: supervised_graphsage_forward.1
= control target key start
LH: loop header
LB: loop body
LE: loop exit
PB: predicated region body
PF: predicated region fallthrough
CT: control target
= control target key end

     0   :  { %s448_s9 = smov 0   ;;  %s450_s10 = smov 0   ;;  %s521_s0 = inlined_call_operand.vmem [shape: f32[8,64], index: 0, kind: input, shape index: {}]   ;;  %s522_s1 = inlined_call_operand.vmem [shape: f32[64,768], index: 1, kind: input, shape index: {}]   ;;  %s523_s2 = inlined_call_operand.vmem [shape: f32[8,768], index: 2, kind: output, shape index: {}]  }
   0x1   :  { %s452_s11 = smov 0  }
   0x2 LB: > { %s352_s12 = sadd.s32 4294967295, %s430_s11   ;;  %s465_s13 = sadd.s32 1, %s430_s11   ;;  %s430_s11 = sphi %s452_s11, %s526_s11   ;;  %s426_s10 = sphi %s450_s10, %s525_s10   ;;  %s422_s9 = sphi %s448_s9, %s524_s9  }
   0x3   : > { %s37_s14 = ssub.s32 %s430_s11, %s465_s13  ;;  %s40_s15 = sadd.s32 1, %s426_s10 }
   0x4   : > { %p38_p0 = scmp.eq.s32.totalorder %s37_s14, 0  ;;  %p47_p1 = scmp.ne.s32.totalorder %s426_s10, %s422_s9 }
   0x5   : > { %p48_p2 = scmp.eq.s32.totalorder %s430_s11, 0  ;;  %p355_p4 = scmp.ge.s32.totalorder %s430_s11, 3 }
   0x6   : > { %s474_s16 = scalar_select %p38_p0, %s426_s10, %s40_s15  }
   0x7   : > { %p49_p3 = por %p48_p2, %p47_p1  ;;  %102 = sbr.rel (%p355_p4) target bundleno = 26 (0x1a), region = 20 }
   0xe   : > { %105 = sbr.rel (!%p49_p3) target bundleno = 26 (0x1a), region = 24  ;;  %s107_s17 = sand.u32 (%p49_p3), 1, %s426_s10  }
   0xf   : > { %s366_s18 = sshll.u32 (%p49_p3), %s430_s11, 4  ;;  %s356_s19 = sshll.u32 (%p49_p3), %s107_s17, 7 }
  0x10   : > { %s482_s22 = scalar_lea.vmem (%p49_p3), %s522_s1, %s366_s18  ;;  %s109_s23 = scalar_lea.vmem (%p49_p3), [#allocation2], %s356_s19 }
  0x11   : > { %v125_v0 = vld [vmem:[%s482_s22] sm:$0xff] (%p49_p3)  ;;  %v127_v1 = vld [vmem:[%s482_s22 + $0x8] sm:$0xff] (%p49_p3)  ;;  %v129_v2 = vld [vmem:[%s482_s22 + $0x30] sm:$0xff] (%p49_p3) }
  0x12   : > { %126 = vst [vmem:[%s109_s23] sm:$0xff] (%p49_p3), %v125_v0  ;;  %128 = vst [vmem:[%s109_s23 + $0x8] sm:$0xff] (%p49_p3), %v127_v1  ;;  %v131_v3 = vld [vmem:[%s482_s22 + $0x38] sm:$0xff] (%p49_p3)  ;;  %v133_v4 = vld [vmem:[%s482_s22 + $0x60] sm:$0xff] (%p49_p3) }
  0x13   : > { %130 = vst [vmem:[%s109_s23 + $0x10] sm:$0xff] (%p49_p3), %v129_v2  ;;  %v135_v5 = vld [vmem:[%s482_s22 + $0x68] sm:$0xff] (%p49_p3)  ;;  %132 = vst [vmem:[%s109_s23 + $0x18] sm:$0xff] (%p49_p3), %v131_v3  ;;  %v137_v6 = vld [vmem:[%s482_s22 + $0x90] sm:$0xff] (%p49_p3) }
  0x14   : > { %134 = vst [vmem:[%s109_s23 + $0x20] sm:$0xff] (%p49_p3), %v133_v4  ;;  %136 = vst [vmem:[%s109_s23 + $0x28] sm:$0xff] (%p49_p3), %v135_v5  ;;  %v139_v7 = vld [vmem:[%s482_s22 + $0x98] sm:$0xff] (%p49_p3)  ;;  %v141_v8 = vld [vmem:[%s482_s22 + $0xc0] sm:$0xff] (%p49_p3) }
  0x15   : > { %138 = vst [vmem:[%s109_s23 + $0x30] sm:$0xff] %v137_v6  ;;  %140 = vst [vmem:[%s109_s23 + $0x38] sm:$0xff] %v139_v7  ;;  %v143_v9 = vld [vmem:[%s482_s22 + $0xc8] sm:$0xff]  ;;  %v145_v10 = vld [vmem:[%s482_s22 + $0xf0] sm:$0xff] }
  0x16   : > { %142 = vst [vmem:[%s109_s23 + $0x40] sm:$0xff] %v141_v8  ;;  %v147_v11 = vld [vmem:[%s482_s22 + $0xf8] sm:$0xff]  ;;  %144 = vst [vmem:[%s109_s23 + $0x48] sm:$0xff] %v143_v9  ;;  %v149_v12 = vld [vmem:[%s482_s22 + $0x120] sm:$0xff] }
  0x17   : > { %146 = vst [vmem:[%s109_s23 + $0x50] sm:$0xff] %v145_v10  ;;  %148 = vst [vmem:[%s109_s23 + $0x58] sm:$0xff] %v147_v11  ;;  %v151_v13 = vld [vmem:[%s482_s22 + $0x128] sm:$0xff]  ;;  %v153_v14 = vld [vmem:[%s482_s22 + $0x150] sm:$0xff] }
  0x18   : > { %150 = vst [vmem:[%s109_s23 + $0x60] sm:$0xff] %v149_v12  ;;  %152 = vst [vmem:[%s109_s23 + $0x68] sm:$0xff] %v151_v13  ;;  %v155_v15 = vld [vmem:[%s482_s22 + $0x158] sm:$0xff] }
  0x19   : > { %154 = vst [vmem:[%s109_s23 + $0x70] sm:$0xff] %v153_v14  ;;  %156 = vst [vmem:[%s109_s23 + $0x78] sm:$0xff] %v155_v15 }
  0x1a PF: > { %p359_p5 = scmp.ge.s32.totalorder %s430_s11, 1  ;;  %p161_p6 = scmp.lt.s32.totalorder %s430_s11, 4 }
  0x1c   : > { %p162_p7 = pnand %p359_p5, %p161_p6 }
  0x1d   : > { %s168_s24 = sand.u32 (!%p162_p7), 1, %s422_s9   ;;  %v432_v16 = vmov (!%p162_p7), 0.0   ;;  %v196_v41 = vld [vmem:[%s521_s0] sm:$0xff] (!%p162_p7)  ;;  %vm213_vm0 = vcmask (!%p162_p7), 523264   ;;  %s361_s29 = sshll.u32 (!%p162_p7), %s352_s12, 1 }
  0x1e   : > { %165 = sbr.rel (%p162_p7) target bundleno = 265 (0x109), region = 47  ;;  %s360_s25 = sshll.u32 (!%p162_p7), %s168_s24, 7  ;;  %281 = vmatprep.mubr.f32.mxu0 (!%p162_p7), %v432_v16 }
  0x1f   : > { %s170_s26 = scalar_lea.vmem (!%p162_p7), [#allocation2], %s360_s25  ;;  %p191_p8 = scmp.lt.s32.totalorder (!%p162_p7), %s361_s29, 5 }
  0x20   : > { %v198_v17 = vld [vmem:[%s170_s26 + $0x8] sm:$0xff] (!%p162_p7)  ;;  %v200_v18 = vld [vmem:[%s170_s26 + $0x18] sm:$0xff] (!%p162_p7)  ;;  %v197_v19 = vld [vmem:[%s170_s26] sm:$0xff] (!%p162_p7) }
  0x21   : > { %v367_v20 = vpack.c.bf16 (!%p162_p7), %v200_v18, %v198_v17  ;;  %v199_v21 = vld [vmem:[%s170_s26 + $0x10] sm:$0xff] (!%p162_p7)  ;;  %v202_v22 = vld [vmem:[%s170_s26 + $0x28] sm:$0xff] (!%p162_p7)  ;;  %v204_v23 = vld [vmem:[%s170_s26 + $0x38] sm:$0xff] (!%p162_p7) }
  0x22   : > { %v369_v24 = vpack.c.bf16 (!%p162_p7), %v199_v21, %v197_v19  ;;  %v371_v25 = vpack.c.bf16 (!%p162_p7), %v204_v23, %v202_v22  ;;  %v201_v26 = vld [vmem:[%s170_s26 + $0x20] sm:$0xff] (!%p162_p7)  ;;  %v203_v27 = vld [vmem:[%s170_s26 + $0x30] sm:$0xff] (!%p162_p7)  ;;  %v206_v28 = vld [vmem:[%s170_s26 + $0x48] sm:$0xff] (!%p162_p7) }
  0x23   : > { %368 = vmatprep.subr.bf16.mxu0 (!%p162_p7), %v367_v20  ;;  %v208_v29 = vld [vmem:[%s170_s26 + $0x58] sm:$0xff] (!%p162_p7)  ;;  %v373_v30 = vpack.c.bf16 (!%p162_p7), %v203_v27, %v201_v26  ;;  %v205_v32 = vld [vmem:[%s170_s26 + $0x40] sm:$0xff] (!%p162_p7)  ;;  %v207_v33 = vld [vmem:[%s170_s26 + $0x50] sm:$0xff] (!%p162_p7) }
  0x24   : > { %370 = vmatpush1.bf16.msra.mxu0 (!%p162_p7), %v369_v24  ;;  %v375_v31 = vpack.c.bf16 (!%p162_p7), %v208_v29, %v206_v28  ;;  %v210_v34 = vld [vmem:[%s170_s26 + $0x68] sm:$0xff] (!%p162_p7)  ;;  %v212_v35 = vld [vmem:[%s170_s26 + $0x78] sm:$0xff] (!%p162_p7)  ;;  %v377_v36 = vpack.c.bf16 (!%p162_p7), %v207_v33, %v205_v32  ;;  %v209_v38 = vld [vmem:[%s170_s26 + $0x60] sm:$0xff] (!%p162_p7) }
  0x25   : > { %372 = vmatprep.subr.bf16.mxu0 %v371_v25  ;;  %v379_v37 = vpack.c.bf16 %v212_v35, %v210_v34  ;;  %v211_v39 = vld [vmem:[%s170_s26 + $0x70] sm:$0xff]  ;;  %s528_s29 = smov (!%p191_p8, %s361_s29), 5 }
  0x26   : > { %v381_v40 = vpack.c.bf16 %v211_v39, %v209_v38  ;;  %s362_s30 = sshll.u32 %s528_s29, 3 }
  0x27   : > { %s194_s5 = scalar_lea.vmem %s523_s2, %s362_s30 }
  0x28   : > { %374 = vmatpush1.bf16.msra.mxu0 %v373_v30 }
  0x29   : > { %376 = vmatprep.subr.bf16.mxu0 %v375_v31 }
  0x2c   : > { %378 = vmatpush1.bf16.msra.mxu0 %v377_v36 }
  0x2d   : > { %380 = vmatprep.subr.bf16.mxu0 %v379_v37 }
  0x30   : > { %382 = vmatpush1.bf16.msra.mxu0 %v381_v40 }
  0x33   : > { %363 = vmatmul.mubr.msk.f32.vlgmr.msra.gmra.mrb[0].mxu0 %vm213_vm0, %v196_v41 }
 0x106   : > { %v283_v42 = vpop.f32.mrb[0].mxu0 }
 0x107   : > { %288 = vst [vmem:[%s194_s5] sm:$0xff] %v283_v42  ;;  %v285_v43 = vpop.f32.mrb[1].mxu0 }
 0x108   : > { %289 = vst [vmem:[%s194_s5 + $0x8] sm:$0xff] %v285_v43 }
 0x109 PF: > { %p9_p9 = scmp.ge.s32.totalorder %s465_s13, 5   ;;  %s524_s9 = smov %s426_s10 }
 0x10a   : > { %s525_s10 = smov %s474_s16  ;;  %s526_s11 = smov %s465_s13 }
 0x10b   :  { %11 = sbr.rel (!%p9_p9) target bundleno = 2 (0x2), region = 86 }

</bundles_post_ra>
